<compile_context>
chip_gen: v7x
topology: tpu7x:2x2x1
jax: 0.10.0
libtpu: 0.0.40
codegen_flags: <defaults>
</compile_context>

<pallas_src>
import jax
import jax.numpy as jnp
from jax.experimental import pallas as pl
from jax.experimental.pallas import tpu as pltpu

N_HID = 3   # Linear(1, 3)
N_OUT = 4   # Linear(3, 4)
LANES = 128


def generator_kernel(x_ref, w1_ref, b1_ref, w2_ref, b2_ref, out_ref):
    # x_ref   : (TR, 128) f32, batch dense over (sublane, lane)
    # w1_ref  : (3,)  SMEM   b1_ref : (3,) SMEM
    # w2_ref  : (12,) SMEM (row-major (in, out))   b2_ref : (4,) SMEM
    # out_ref : (4, TR, 128) f32
    x = x_ref[...]                                            # (TR, 128)

    # Layer 1 (in_features = 1): h_j = sigmoid(x * w1[j] + b1[j])
    # Pure VPU broadcast-FMA + EUP sigmoid; hidden state stays in vregs.
    h = [jax.nn.sigmoid(x * w1_ref[j] + b1_ref[j]) for j in range(N_HID)]

    # Layer 2 (in_features = 3): y_k = sigmoid(sum_j h_j * w2[j,k] + b2[k])
    for k in range(N_OUT):
        acc = (b2_ref[k]
               + h[0] * w2_ref[0 * N_OUT + k]
               + h[1] * w2_ref[1 * N_OUT + k]
               + h[2] * w2_ref[2 * N_OUT + k])
        out_ref[k, :, :] = jax.nn.sigmoid(acc)                # dense (TR,128) store


def generator_forward(x, w1, b1, w2, b2, *, block_rows=64):
    """x: (B, 1) float32 -> (B, 4); exactly
    nn.Sequential(Linear(1,3), Sigmoid(), Linear(3,4), Sigmoid())."""
    B = x.shape[0]
    rows = pl.cdiv(B, LANES)               # batch rows of 128 lanes
    tr = min(block_rows, rows)             # rows per grid step
    rows_p = pl.cdiv(rows, tr) * tr        # pad so the grid tiles evenly
    Bp = rows_p * LANES

    # Lane/sublane-dense batch layout: element b lives at (b // 128, b % 128).
    x_flat = jnp.zeros((Bp,), jnp.float32).at[:B].set(x[:, 0].astype(jnp.float32))
    x2 = x_flat.reshape(rows_p, LANES)

    # Flatten the 22 parameter scalars into 1-D arrays resident in SMEM.
    w1f = w1.reshape(-1).astype(jnp.float32)   # (3,)
    b1f = b1.reshape(-1).astype(jnp.float32)   # (3,)
    w2f = w2.reshape(-1).astype(jnp.float32)   # (12,), row-major (in, out)
    b2f = b2.reshape(-1).astype(jnp.float32)   # (4,)

    smem = pl.BlockSpec(memory_space=pltpu.MemorySpace.SMEM)

    out_t = pl.pallas_call(
        generator_kernel,
        out_shape=jax.ShapeDtypeStruct((N_OUT, rows_p, LANES), jnp.float32),
        grid_spec=pltpu.PrefetchScalarGridSpec(
            num_scalar_prefetch=0,
            grid=(rows_p // tr,),
            in_specs=[
                pl.BlockSpec((tr, LANES), lambda i: (i, 0)),   # batch tile
                smem, smem, smem, smem,                        # params in SMEM
            ],
            out_specs=pl.BlockSpec((N_OUT, tr, LANES), lambda i: (0, i, 0)),
        ),
        compiler_params=pltpu.CompilerParams(
            dimension_semantics=("parallel",)),
    )(x2, w1f, b1f, w2f, b2f)

    # (4, rows_p, 128) -> (Bp, 4) -> (B, 4)   (wrapper-side layout plumbing)
    return out_t.transpose(1, 2, 0).reshape(Bp, N_OUT)[:B]


def init_generator_params(key):
    """PyTorch-style default Linear init (uniform in ±1/sqrt(fan_in)).
    Weights stored as (in, out)."""
    k1, k2, k3, k4 = jax.random.split(key, 4)
    bound1 = 1.0 / jnp.sqrt(1.0)   # fan_in = 1
    bound2 = 1.0 / jnp.sqrt(3.0)   # fan_in = 3
    w1 = jax.random.uniform(k1, (1, N_HID), jnp.float32, -bound1, bound1)
    b1 = jax.random.uniform(k2, (N_HID,), jnp.float32, -bound1, bound1)
    w2 = jax.random.uniform(k3, (N_HID, N_OUT), jnp.float32, -bound2, bound2)
    b2 = jax.random.uniform(k4, (N_OUT,), jnp.float32, -bound2, bound2)
    return w1, b1, w2, b2


def generator_reference(x, w1, b1, w2, b2):
    h = jax.nn.sigmoid(x @ w1 + b1)
    return jax.nn.sigmoid(h @ w2 + b2)


if __name__ == "__main__":
    key = jax.random.PRNGKey(0)
    k_params, k_x = jax.random.split(key)
    w1, b1, w2, b2 = init_generator_params(k_params)

    # (1) tiny batch, matching the original script feeding a random scalar seed.
    #     (At batch sizes this small a fused XLA path would beat any kernel;
    #     the Pallas kernel pays off once B reaches thousands of rows.)
    B = 8
    x = jax.random.uniform(k_x, (B, 1), jnp.float32)
    out = jax.block_until_ready(generator_forward(x, w1, b1, w2, b2))
    ref = generator_reference(x, w1, b1, w2, b2)
    assert out.shape == (B, 4)
    assert jnp.allclose(out, ref, atol=1e-5, rtol=1e-5)

    # (2) a batch that exercises padding + a multi-tile parallel grid.
    B2 = 3000
    x2 = jax.random.uniform(jax.random.fold_in(k_x, 1), (B2, 1), jnp.float32)
    out2 = jax.block_until_ready(
        generator_forward(x2, w1, b1, w2, b2, block_rows=8))
    ref2 = generator_reference(x2, w1, b1, w2, b2)
    assert out2.shape == (B2, 4)
    assert jnp.allclose(out2, ref2, atol=1e-5, rtol=1e-5)

    print("KERNEL_OK")
</pallas_src>

<mosaic_0001>
module attributes {stable_mosaic.version = 11 : i64} {
  func.func @generator_kernel(%arg0: i32, %arg1: memref<1x128xf32, #tpu.memory_space<vmem>>, %arg2: memref<3xf32, #tpu.memory_space<smem>>, %arg3: memref<3xf32, #tpu.memory_space<smem>>, %arg4: memref<12xf32, #tpu.memory_space<smem>>, %arg5: memref<4xf32, #tpu.memory_space<smem>>, %arg6: memref<4x1x128xf32, #tpu.memory_space<vmem>>) attributes {dimension_semantics = [#tpu.dimension_semantics<parallel>], iteration_bounds = array<i64: 1>, scalar_prefetch = 0 : i64, scratch_operands = 0 : i64, tpu.core_type = #tpu.core_type<tc>, window_params = [{transform_indices = @transform_0, window_bounds = array<i64: 1, 128>}, {transform_indices = @transform_1, window_bounds = array<i64: 3>}, {transform_indices = @transform_2, window_bounds = array<i64: 3>}, {transform_indices = @transform_3, window_bounds = array<i64: 12>}, {transform_indices = @transform_4, window_bounds = array<i64: 4>}, {transform_indices = @transform_5, window_bounds = array<i64: 4, 1, 128>}]} {
    %c0 = arith.constant 0 : index
    %c0_0 = arith.constant 0 : index
    %0 = vector.load %arg1[%c0, %c0_0] : memref<1x128xf32, #tpu.memory_space<vmem>>, vector<1x128xf32>
    %c0_1 = arith.constant 0 : index
    %1 = memref.load %arg2[%c0_1] : memref<3xf32, #tpu.memory_space<smem>>
    %2 = vector.broadcast %1 : f32 to vector<1x128xf32>
    %3 = arith.mulf %0, %2 : vector<1x128xf32>
    %c0_2 = arith.constant 0 : index
    %4 = memref.load %arg3[%c0_2] : memref<3xf32, #tpu.memory_space<smem>>
    %5 = vector.broadcast %4 : f32 to vector<1x128xf32>
    %6 = arith.addf %3, %5 : vector<1x128xf32>
    %7 = arith.negf %6 : vector<1x128xf32>
    %8 = math.exp %7 : vector<1x128xf32>
    %cst = arith.constant 1.000000e+00 : f32
    %9 = vector.broadcast %cst : f32 to vector<1x128xf32>
    %10 = arith.addf %9, %8 : vector<1x128xf32>
    %11 = arith.divf %9, %10 : vector<1x128xf32>
    %c1 = arith.constant 1 : index
    %12 = memref.load %arg2[%c1] : memref<3xf32, #tpu.memory_space<smem>>
    %13 = vector.broadcast %12 : f32 to vector<1x128xf32>
    %14 = arith.mulf %0, %13 : vector<1x128xf32>
    %c1_3 = arith.constant 1 : index
    %15 = memref.load %arg3[%c1_3] : memref<3xf32, #tpu.memory_space<smem>>
    %16 = vector.broadcast %15 : f32 to vector<1x128xf32>
    %17 = arith.addf %14, %16 : vector<1x128xf32>
    %18 = arith.negf %17 : vector<1x128xf32>
    %19 = math.exp %18 : vector<1x128xf32>
    %cst_4 = arith.constant 1.000000e+00 : f32
    %20 = vector.broadcast %cst_4 : f32 to vector<1x128xf32>
    %21 = arith.addf %20, %19 : vector<1x128xf32>
    %22 = arith.divf %20, %21 : vector<1x128xf32>
    %c2 = arith.constant 2 : index
    %23 = memref.load %arg2[%c2] : memref<3xf32, #tpu.memory_space<smem>>
    %24 = vector.broadcast %23 : f32 to vector<1x128xf32>
    %25 = arith.mulf %0, %24 : vector<1x128xf32>
    %c2_5 = arith.constant 2 : index
    %26 = memref.load %arg3[%c2_5] : memref<3xf32, #tpu.memory_space<smem>>
    %27 = vector.broadcast %26 : f32 to vector<1x128xf32>
    %28 = arith.addf %25, %27 : vector<1x128xf32>
    %29 = arith.negf %28 : vector<1x128xf32>
    %30 = math.exp %29 : vector<1x128xf32>
    %cst_6 = arith.constant 1.000000e+00 : f32
    %31 = vector.broadcast %cst_6 : f32 to vector<1x128xf32>
    %32 = arith.addf %31, %30 : vector<1x128xf32>
    %33 = arith.divf %31, %32 : vector<1x128xf32>
    %c0_7 = arith.constant 0 : index
    %34 = memref.load %arg5[%c0_7] : memref<4xf32, #tpu.memory_space<smem>>
    %c0_8 = arith.constant 0 : index
    %35 = memref.load %arg4[%c0_8] : memref<12xf32, #tpu.memory_space<smem>>
    %36 = vector.broadcast %35 : f32 to vector<1x128xf32>
    %37 = arith.mulf %11, %36 : vector<1x128xf32>
    %38 = vector.broadcast %34 : f32 to vector<1x128xf32>
    %39 = arith.addf %38, %37 : vector<1x128xf32>
    %c4 = arith.constant 4 : index
    %40 = memref.load %arg4[%c4] : memref<12xf32, #tpu.memory_space<smem>>
    %41 = vector.broadcast %40 : f32 to vector<1x128xf32>
    %42 = arith.mulf %22, %41 : vector<1x128xf32>
    %43 = arith.addf %39, %42 : vector<1x128xf32>
    %c8 = arith.constant 8 : index
    %44 = memref.load %arg4[%c8] : memref<12xf32, #tpu.memory_space<smem>>
    %45 = vector.broadcast %44 : f32 to vector<1x128xf32>
    %46 = arith.mulf %33, %45 : vector<1x128xf32>
    %47 = arith.addf %43, %46 : vector<1x128xf32>
    %48 = arith.negf %47 : vector<1x128xf32>
    %49 = math.exp %48 : vector<1x128xf32>
    %cst_9 = arith.constant 1.000000e+00 : f32
    %50 = vector.broadcast %cst_9 : f32 to vector<1x128xf32>
    %51 = arith.addf %50, %49 : vector<1x128xf32>
    %52 = arith.divf %50, %51 : vector<1x128xf32>
    %c0_10 = arith.constant 0 : index
    %c0_11 = arith.constant 0 : index
    %c0_12 = arith.constant 0 : index
    %53 = vector.load %arg6[%c0_10, %c0_11, %c0_12] : memref<4x1x128xf32, #tpu.memory_space<vmem>>, vector<1x1x128xf32>
    %54 = vector.shape_cast %53 : vector<1x1x128xf32> to vector<1x128xf32>
    %55 = vector.shape_cast %52 : vector<1x128xf32> to vector<1x1x128xf32>
    tpu.vector_store %arg6[%c0_10, %c0_11, %c0_12], %55 {strides = array<i32>} : memref<4x1x128xf32, #tpu.memory_space<vmem>>, vector<1x1x128xf32>,
    %c1_13 = arith.constant 1 : index
    %56 = memref.load %arg5[%c1_13] : memref<4xf32, #tpu.memory_space<smem>>
    %c1_14 = arith.constant 1 : index
    %57 = memref.load %arg4[%c1_14] : memref<12xf32, #tpu.memory_space<smem>>
    %58 = vector.broadcast %57 : f32 to vector<1x128xf32>
    %59 = arith.mulf %11, %58 : vector<1x128xf32>
    %60 = vector.broadcast %56 : f32 to vector<1x128xf32>
    %61 = arith.addf %60, %59 : vector<1x128xf32>
    %c5 = arith.constant 5 : index
    %62 = memref.load %arg4[%c5] : memref<12xf32, #tpu.memory_space<smem>>
    %63 = vector.broadcast %62 : f32 to vector<1x128xf32>
    %64 = arith.mulf %22, %63 : vector<1x128xf32>
    %65 = arith.addf %61, %64 : vector<1x128xf32>
    %c9 = arith.constant 9 : index
    %66 = memref.load %arg4[%c9] : memref<12xf32, #tpu.memory_space<smem>>
    %67 = vector.broadcast %66 : f32 to vector<1x128xf32>
    %68 = arith.mulf %33, %67 : vector<1x128xf32>
    %69 = arith.addf %65, %68 : vector<1x128xf32>
    %70 = arith.negf %69 : vector<1x128xf32>
    %71 = math.exp %70 : vector<1x128xf32>
    %cst_15 = arith.constant 1.000000e+00 : f32
    %72 = vector.broadcast %cst_15 : f32 to vector<1x128xf32>
    %73 = arith.addf %72, %71 : vector<1x128xf32>
    %74 = arith.divf %72, %73 : vector<1x128xf32>
    %c1_16 = arith.constant 1 : index
    %c0_17 = arith.constant 0 : index
    %c0_18 = arith.constant 0 : index
    %75 = vector.load %arg6[%c1_16, %c0_17, %c0_18] : memref<4x1x128xf32, #tpu.memory_space<vmem>>, vector<1x1x128xf32>
    %76 = vector.shape_cast %75 : vector<1x1x128xf32> to vector<1x128xf32>
    %77 = vector.shape_cast %74 : vector<1x128xf32> to vector<1x1x128xf32>
    tpu.vector_store %arg6[%c1_16, %c0_17, %c0_18], %77 {strides = array<i32>} : memref<4x1x128xf32, #tpu.memory_space<vmem>>, vector<1x1x128xf32>,
    %c2_19 = arith.constant 2 : index
    %78 = memref.load %arg5[%c2_19] : memref<4xf32, #tpu.memory_space<smem>>
    %c2_20 = arith.constant 2 : index
    %79 = memref.load %arg4[%c2_20] : memref<12xf32, #tpu.memory_space<smem>>
    %80 = vector.broadcast %79 : f32 to vector<1x128xf32>
    %81 = arith.mulf %11, %80 : vector<1x128xf32>
    %82 = vector.broadcast %78 : f32 to vector<1x128xf32>
    %83 = arith.addf %82, %81 : vector<1x128xf32>
    %c6 = arith.constant 6 : index
    %84 = memref.load %arg4[%c6] : memref<12xf32, #tpu.memory_space<smem>>
    %85 = vector.broadcast %84 : f32 to vector<1x128xf32>
    %86 = arith.mulf %22, %85 : vector<1x128xf32>
    %87 = arith.addf %83, %86 : vector<1x128xf32>
    %c10 = arith.constant 10 : index
    %88 = memref.load %arg4[%c10] : memref<12xf32, #tpu.memory_space<smem>>
    %89 = vector.broadcast %88 : f32 to vector<1x128xf32>
    %90 = arith.mulf %33, %89 : vector<1x128xf32>
    %91 = arith.addf %87, %90 : vector<1x128xf32>
    %92 = arith.negf %91 : vector<1x128xf32>
    %93 = math.exp %92 : vector<1x128xf32>
    %cst_21 = arith.constant 1.000000e+00 : f32
    %94 = vector.broadcast %cst_21 : f32 to vector<1x128xf32>
    %95 = arith.addf %94, %93 : vector<1x128xf32>
    %96 = arith.divf %94, %95 : vector<1x128xf32>
    %c2_22 = arith.constant 2 : index
    %c0_23 = arith.constant 0 : index
    %c0_24 = arith.constant 0 : index
    %97 = vector.load %arg6[%c2_22, %c0_23, %c0_24] : memref<4x1x128xf32, #tpu.memory_space<vmem>>, vector<1x1x128xf32>
    %98 = vector.shape_cast %97 : vector<1x1x128xf32> to vector<1x128xf32>
    %99 = vector.shape_cast %96 : vector<1x128xf32> to vector<1x1x128xf32>
    tpu.vector_store %arg6[%c2_22, %c0_23, %c0_24], %99 {strides = array<i32>} : memref<4x1x128xf32, #tpu.memory_space<vmem>>, vector<1x1x128xf32>,
    %c3 = arith.constant 3 : index
    %100 = memref.load %arg5[%c3] : memref<4xf32, #tpu.memory_space<smem>>
    %c3_25 = arith.constant 3 : index
    %101 = memref.load %arg4[%c3_25] : memref<12xf32, #tpu.memory_space<smem>>
    %102 = vector.broadcast %101 : f32 to vector<1x128xf32>
    %103 = arith.mulf %11, %102 : vector<1x128xf32>
    %104 = vector.broadcast %100 : f32 to vector<1x128xf32>
    %105 = arith.addf %104, %103 : vector<1x128xf32>
    %c7 = arith.constant 7 : index
    %106 = memref.load %arg4[%c7] : memref<12xf32, #tpu.memory_space<smem>>
    %107 = vector.broadcast %106 : f32 to vector<1x128xf32>
    %108 = arith.mulf %22, %107 : vector<1x128xf32>
    %109 = arith.addf %105, %108 : vector<1x128xf32>
    %c11 = arith.constant 11 : index
    %110 = memref.load %arg4[%c11] : memref<12xf32, #tpu.memory_space<smem>>
    %111 = vector.broadcast %110 : f32 to vector<1x128xf32>
    %112 = arith.mulf %33, %111 : vector<1x128xf32>
    %113 = arith.addf %109, %112 : vector<1x128xf32>
    %114 = arith.negf %113 : vector<1x128xf32>
    %115 = math.exp %114 : vector<1x128xf32>
    %cst_26 = arith.constant 1.000000e+00 : f32
    %116 = vector.broadcast %cst_26 : f32 to vector<1x128xf32>
    %117 = arith.addf %116, %115 : vector<1x128xf32>
    %118 = arith.divf %116, %117 : vector<1x128xf32>
    %c3_27 = arith.constant 3 : index
    %c0_28 = arith.constant 0 : index
    %c0_29 = arith.constant 0 : index
    %119 = vector.load %arg6[%c3_27, %c0_28, %c0_29] : memref<4x1x128xf32, #tpu.memory_space<vmem>>, vector<1x1x128xf32>
    %120 = vector.shape_cast %119 : vector<1x1x128xf32> to vector<1x128xf32>
    %121 = vector.shape_cast %118 : vector<1x128xf32> to vector<1x1x128xf32>
    tpu.vector_store %arg6[%c3_27, %c0_28, %c0_29], %121 {strides = array<i32>} : memref<4x1x128xf32, #tpu.memory_space<vmem>>, vector<1x1x128xf32>,
    return
  }
  func.func @transform_0(%arg0: i32) -> (i32, i32) {
    %c0_i32 = arith.constant 0 : i32
    %c0_i32_0 = arith.constant 0 : i32
    return %arg0, %c0_i32 : i32, i32
  }
  func.func @transform_1(%arg0: i32) -> i32 {
    %c0_i32 = arith.constant 0 : i32
    %c0_i32_0 = arith.constant 0 : i32
    return %c0_i32 : i32
  }
  func.func @transform_2(%arg0: i32) -> i32 {
    %c0_i32 = arith.constant 0 : i32
    %c0_i32_0 = arith.constant 0 : i32
    return %c0_i32 : i32
  }
  func.func @transform_3(%arg0: i32) -> i32 {
    %c0_i32 = arith.constant 0 : i32
    %c0_i32_0 = arith.constant 0 : i32
    return %c0_i32 : i32
  }
  func.func @transform_4(%arg0: i32) -> i32 {
    %c0_i32 = arith.constant 0 : i32
    %c0_i32_0 = arith.constant 0 : i32
    return %c0_i32 : i32
  }
  func.func @transform_5(%arg0: i32) -> (i32, i32, i32) {
    %c0_i32 = arith.constant 0 : i32
    %c0_i32_0 = arith.constant 0 : i32
    %c0_i32_1 = arith.constant 0 : i32
    return %c0_i32, %arg0, %c0_i32_0 : i32, i32, i32
  }
}

</mosaic_0001>

<bundles_post_ra>
// kernel: tpu_custom_call.1
= control target key start
LH: loop header
LB: loop body
LE: loop exit
PB: predicated region body
PF: predicated region fallthrough
CT: control target
= control target key end

     0   :  { %10 = vsyncpa [#allocation3], 0  ;;  %s504_s0 = inlined_call_operand.hbm [shape: f32[1,128], index: 0, kind: input, shape index: {}]   ;;  %s505_s1 = inlined_call_operand.vmem [shape: f32[3], index: 1, kind: input, shape index: {}]   ;;  %s506_s2 = inlined_call_operand.vmem [shape: f32[3], index: 2, kind: input, shape index: {}]   ;;  %s507_s3 = inlined_call_operand.vmem [shape: f32[12], index: 3, kind: input, shape index: {}]   ;;  %s508_s4 = inlined_call_operand.vmem [shape: f32[4], index: 4, kind: input, shape index: {}]   ;;  %s509_s5 = inlined_call_operand.hbm [shape: f32[4,1,128], index: 5, kind: output, shape index: {}]  }
   0x1   :  { %11 = vsyncpa [#allocation5], 0 }
   0x2   :  { %12 = vsyncpa [#allocation8], 0 }
   0x3   :  { %13 = vsyncpa [#allocation11], 0  ;;  %s41_s20 = sshll.u32 %s506_s2, 4  ;;  %s42_s20 = int_to_ptr.vmem [resolvable:$true] %s41_s20 }
   0x4   :  { %14 = vsyncpa [#allocation4], 0  ;;  %s286_s21 = scalar_lea.vmem %s42_s20, 16  ;;  %p291_p1 = scmp.lt.s32.totalorder %s42_s20, %s42_s20 }
   0x5   :  { %p287_p0 = scmp.ne.s32.totalorder %s42_s20, %s286_s21  ;;  %p292_p2 = scmp.lt.s32.totalorder %s286_s21, %s286_s21 }
   0x7   :  { %p293_p3 = por %p292_p2, %p291_p1 }
   0x9   :  { %p294_p4 = pnand %p293_p3, %p287_p0 }
   0xb   :  { %297 = shalt.err (!%p294_p4)
}
   0xc   :  { %s388_s22 = smov [#allocation7]   ;;  %s389_s23 = smov [#allocation2]  }
   0xd   :  { %44 = dma.vmem_to_smem %s42_s20, 16, %s388_s22, [#allocation8]  }
   0xe   :  { %s21_s24 = sshll.u32 %s389_s23, 4  ;;  %s31_s27 = sshll.u32 %s505_s1, 4  ;;  %s22_s24 = int_to_ptr.vmem [resolvable:$true] %s21_s24  ;;  %s32_s27 = int_to_ptr.vmem [resolvable:$true] %s31_s27 }
   0xf   :  { %s298_s29 = scalar_lea.hbm %s504_s0, 16 }
  0x10   :  { %p299_p5 = scmp.ne.s32.totalorder %s504_s0, %s298_s29  ;;  %p302_p6 = scmp.lt.u32.totalorder %s298_s29, %s504_s0 }
  0x12   :  { %p304_p7 = pnand %p302_p6, %p299_p5 }
  0x14   :  { %307 = shalt.err (!%p304_p7)
}
  0x15   :  { %s308_s9 = scalar_lea.vmem %s22_s24, 16  ;;  %s312_s10 = scalar_lea.vmem %s22_s24, 32 }
  0x16   :  { %p309_p8 = scmp.ne.s32.totalorder %s22_s24, %s308_s9  ;;  %p313_p9 = scmp.lt.s32.totalorder %s22_s24, %s22_s24 }
  0x17   :  { %p314_p10 = scmp.lt.s32.totalorder %s312_s10, %s308_s9 }
  0x19   :  { %p315_p11 = por %p314_p10, %p313_p9 }
  0x1b   :  { %p316_p12 = pnand %p315_p11, %p309_p8 }
  0x1d   :  { %319 = shalt.err (!%p316_p12)
}
  0x1e   :  { %24 = dma.hbm_to_vmem [thread:$0]  %s504_s0, 16, %s22_s24, [#allocation3]  }
  0x1f   :  { %s51_s14 = sshll.u32 %s507_s3, 4  ;;  %s320_s15 = scalar_lea.vmem %s32_s27, 16  ;;  %s52_s14 = int_to_ptr.vmem [resolvable:$true] %s51_s14 }
  0x20   :  { %p321_p13 = scmp.ne.s32.totalorder %s32_s27, %s320_s15  ;;  %p325_p0 = scmp.lt.s32.totalorder %s32_s27, %s32_s27 }
  0x21   :  { %p326_p1 = scmp.lt.s32.totalorder %s320_s15, %s320_s15 }
  0x23   :  { %p327_p2 = por %p326_p1, %p325_p0 }
  0x25   :  { %p328_p3 = pnand %p327_p2, %p321_p13 }
  0x27   :  { %331 = shalt.err (!%p328_p3)
}
  0x28   :  { %s390_s16 = smov [#allocation6]   ;;  %s332_s17 = scalar_lea.vmem %s52_s14, 16 }
  0x29   :  { %34 = dma.vmem_to_smem %s32_s27, 16, %s390_s16, [#allocation5]  }
  0x2a   :  { %p333_p4 = scmp.ne.s32.totalorder %s52_s14, %s332_s17  ;;  %p337_p5 = scmp.lt.s32.totalorder %s52_s14, %s52_s14 }
  0x2b   :  { %p338_p6 = scmp.lt.s32.totalorder %s332_s17, %s332_s17 }
  0x2d   :  { %p339_p7 = por %p338_p6, %p337_p5 }
  0x2f   :  { %p340_p8 = pnand %p339_p7, %p333_p4 }
  0x31   :  { %343 = shalt.err (!%p340_p8)
}
  0x32   :  { %s391_s0 = smov [#allocation9]   ;;  %s61_s19 = sshll.u32 %s508_s4, 4  ;;  %s62_s19 = int_to_ptr.vmem [resolvable:$true] %s61_s19 }
  0x33   :  { %54 = dma.vmem_to_smem %s52_s14, 16, %s391_s0, [#allocation8]  }
  0x34   :  { %s344_s20 = scalar_lea.vmem %s62_s19, 16  ;;  %p349_p10 = scmp.lt.s32.totalorder %s62_s19, %s62_s19 }
  0x35   :  { %p345_p9 = scmp.ne.s32.totalorder %s62_s19, %s344_s20  ;;  %p350_p11 = scmp.lt.s32.totalorder %s344_s20, %s344_s20 }
  0x37   :  { %p351_p12 = por %p350_p11, %p349_p10 }
  0x39   :  { %p352_p13 = pnand %p351_p12, %p345_p9 }
  0x3b   :  { %355 = shalt.err (!%p352_p13)
}
  0x3c   :  { %s392_s21 = smov [#allocation10]  }
  0x3d   :  { %64 = dma.vmem_to_smem %s62_s19, 16, %s392_s21, [#allocation11]  }
  0x3e   :  { %378 = dma.done.wait [#allocation3], 16  }
  0x3f   :  { %379 = vsyncadd [#allocation3], 4294967280 }
  0x40   :  { %380 = dma.done.wait [#allocation5], 16  }
  0x41   :  { %381 = vsyncadd [#allocation5], 4294967280 }
  0x42   :  { %382 = dma.done.wait [#allocation8], 32  }
  0x43   :  { %383 = vsyncadd [#allocation8], 4294967264 }
  0x44   :  { %384 = dma.done.wait [#allocation11], 16  }
  0x45   :  { %385 = vsyncadd [#allocation11], 4294967280 }
  0x46   :  { %80 = sfence }
  0x47   :  { %s82_s4 = sld [smem:[#allocation6]]  ;;  %s226_s23 = sld [smem:[#allocation6 + $0x1]]  ;;  %v81_v0 = vld [vmem:[#allocation2] sm:$0x1] }
  0x48   :  { %s85_s22 = sld [smem:[#allocation7]]  ;;  %s227_s24 = sld [smem:[#allocation7 + $0x1]] }
  0x49   :  { %s229_s25 = sld [smem:[#allocation6 + $0x2]]  ;;  %s450_s27 = sld [smem:[#allocation10]] }
  0x4a   :  { %s230_s26 = sld [smem:[#allocation7 + $0x2]]  ;;  %s452_s2 = sld [smem:[#allocation9]] }
  0x4b   :  { %s454_s28 = sld [smem:[#allocation9 + $0x4]]  ;;  %s456_s29 = sld [smem:[#allocation9 + $0x8]] }
  0x4c   :  { %s458_s30 = sld [smem:[#allocation10 + $0x1]]  ;;  %s462_s7 = sld [smem:[#allocation9 + $0x5]] }
  0x4d   :  { %v83_v1 = vstv %s82_s4  ;;  %v95_v4 = vstv %s226_s23  ;;  %s460_s6 = sld [smem:[#allocation9 + $0x1]]  ;;  %s466_s9 = sld [smem:[#allocation10 + $0x2]] }
  0x4e   :  { %v86_v2 = vstv %s85_s22  ;;  %v84_v3 = vmul.f32 %v83_v1, %v81_v0  ;;  %v98_v5 = vstv %s227_s24  ;;  %v96_v6 = vmul.f32 %v95_v4, %v81_v0  ;;  %s464_s8 = sld [smem:[#allocation9 + $0x9]]  ;;  %s468_s10 = sld [smem:[#allocation9 + $0x2]] }
  0x4f   :  { %v107_v7 = vstv %s229_s25  ;;  %s470_s1 = sld [smem:[#allocation9 + $0x6]]  ;;  %s246_s11 = sld [smem:[#allocation9 + $0x3]]  ;;  %v122_v23 = vstv %s450_s27 }
  0x50   :  { %v110_v8 = vstv %s230_s26  ;;  %v87_v9 = vadd.f32 %v86_v2, %v84_v3  ;;  %v108_v10 = vmul.f32 %v107_v7, %v81_v0  ;;  %v99_v11 = vadd.f32 %v98_v5, %v96_v6  ;;  %s472_s12 = sld [smem:[#allocation9 + $0xa]]  ;;  %s247_s13 = sld [smem:[#allocation9 + $0x7]] }
  0x51   :  { %s474_s14 = sld [smem:[#allocation10 + $0x3]]  ;;  %v120_v22 = vstv %s452_s2  ;;  %v125_v24 = vstv %s454_s28  ;;  %v129_v25 = vstv %s456_s29  ;;  %s393_s16 = smov [#allocation12]  }
  0x52   :  { %v225_v12 = vmul.f32 -1.442695, %v87_v9  ;;  %v111_v13 = vadd.f32 %v110_v8, %v108_v10  ;;  %v228_v14 = vmul.f32 -1.442695, %v99_v11  ;;  %s476_s15 = sld [smem:[#allocation9 + $0xb]]  ;;  %v143_v27 = vstv %s458_s30  ;;  %s210_s17 = sshll.u32 %s393_s16, 4  ;;  %s211_s17 = int_to_ptr.vmem [resolvable:$true] %s210_s17 }
  0x53   :  { %v141_v26 = vstv %s460_s6  ;;  %v146_v30 = vstv %s462_s7  ;;  %v165_v35 = vstv %s466_s9  ;;  %s356_s0 = scalar_lea.vmem %s211_s17, 64  ;;  %p361_p1 = scmp.lt.s32.totalorder %s211_s17, %s211_s17 }
  0x54   :  { %258 = vpow2.f32 %v225_v12  ;;  %v231_v15 = vmul.f32 -1.442695, %v111_v13  ;;  %v163_v28 = vstv %s468_s10  ;;  %v150_v31 = vstv %s464_s8  ;;  %p357_p0 = scmp.ne.s32.totalorder %s211_s17, %s356_s0  ;;  %p362_p2 = scmp.lt.s32.totalorder %s356_s0, %s356_s0 }
  0x55   :  { %260 = vpow2.f32 %v228_v14  ;;  %v185_v29 = vstv %s246_s11  ;;  %v168_v32 = vstv %s470_s1 }
  0x56   :  { %262 = vpow2.f32 %v231_v15  ;;  %v190_v33 = vstv %s247_s13  ;;  %v172_v36 = vstv %s472_s12  ;;  %p363_p3 = por %p362_p2, %p361_p1 }
  0x57   :  { %v187_v37 = vstv %s474_s14 }
  0x58   :  { %v194_v38 = vstv %s476_s15  ;;  %p364_p4 = pnand %p363_p3, %p357_p0 }
  0x5e   :  { %v259_v16 = vpop.eup %258 }
  0x5f   :  { %v261_v17 = vpop.eup %260  ;;  %v91_v18 = vadd.f32 1.0, %v259_v16 }
  0x60   :  { %v263_v19 = vpop.eup %262  ;;  %v103_v20 = vadd.f32 1.0, %v261_v17 }
  0x61   :  { %264 = vrcp.f32 %v91_v18  ;;  %v115_v21 = vadd.f32 1.0, %v263_v19 }
  0x62   :  { %266 = vrcp.f32 %v103_v20 }
  0x63   :  { %268 = vrcp.f32 %v115_v21 }
  0x6b   :  { %v265_v34 = vpop.eup %264 }
  0x6c   :  { %v267_v39 = vpop.eup %266  ;;  %v121_v40 = vmul.f32 %v265_v34, %v120_v22  ;;  %v142_v41 = vmul.f32 %v265_v34, %v141_v26  ;;  %v164_v42 = vmul.f32 %v265_v34, %v163_v28  ;;  %v186_v43 = vmul.f32 %v265_v34, %v185_v29 }
  0x6d   :  { %v269_v44 = vpop.eup %268  ;;  %v126_v45 = vmul.f32 %v267_v39, %v125_v24  ;;  %v147_v46 = vmul.f32 %v267_v39, %v146_v30  ;;  %v169_v47 = vmul.f32 %v267_v39, %v168_v32  ;;  %v191_v48 = vmul.f32 %v267_v39, %v190_v33 }
  0x6e   :  { %v123_v49 = vadd.f32 %v122_v23, %v121_v40  ;;  %v130_v50 = vmul.f32 %v269_v44, %v129_v25  ;;  %v144_v51 = vadd.f32 %v143_v27, %v142_v41  ;;  %v151_v52 = vmul.f32 %v269_v44, %v150_v31 }
  0x6f   :  { %v166_v53 = vadd.f32 %v165_v35, %v164_v42  ;;  %v173_v54 = vmul.f32 %v269_v44, %v172_v36  ;;  %v188_v55 = vadd.f32 %v187_v37, %v186_v43  ;;  %v195_v56 = vmul.f32 %v269_v44, %v194_v38 }
  0x70   :  { %v127_v57 = vadd.f32 %v126_v45, %v123_v49  ;;  %v148_v58 = vadd.f32 %v147_v46, %v144_v51 }
  0x71   :  { %v170_v59 = vadd.f32 %v169_v47, %v166_v53  ;;  %v192_v60 = vadd.f32 %v191_v48, %v188_v55 }
  0x72   :  { %v131_v61 = vadd.f32 %v130_v50, %v127_v57  ;;  %v152_v62 = vadd.f32 %v151_v52, %v148_v58 }
  0x73   :  { %v174_v63 = vadd.f32 %v173_v54, %v170_v59  ;;  %v196_v0 = vadd.f32 %v195_v56, %v192_v60 }
  0x74   :  { %v234_v1 = vmul.f32 -1.442695, %v131_v61  ;;  %v239_v2 = vmul.f32 -1.442695, %v152_v62 }
  0x75   :  { %v244_v3 = vmul.f32 -1.442695, %v174_v63  ;;  %v249_v4 = vmul.f32 -1.442695, %v196_v0 }
  0x76   :  { %270 = vpow2.f32 %v234_v1 }
  0x77   :  { %272 = vpow2.f32 %v239_v2 }
  0x78   :  { %274 = vpow2.f32 %v244_v3 }
  0x79   :  { %276 = vpow2.f32 %v249_v4 }
  0x80   :  { %v271_v5 = vpop.eup %270 }
  0x81   :  { %v273_v6 = vpop.eup %272  ;;  %v135_v7 = vadd.f32 1.0, %v271_v5 }
  0x82   :  { %v275_v8 = vpop.eup %274  ;;  %v156_v9 = vadd.f32 1.0, %v273_v6 }
  0x83   :  { %v277_v10 = vpop.eup %276  ;;  %278 = vrcp.f32 %v135_v7  ;;  %v178_v11 = vadd.f32 1.0, %v275_v8 }
  0x84   :  { %280 = vrcp.f32 %v156_v9  ;;  %v200_v12 = vadd.f32 1.0, %v277_v10 }
  0x85   :  { %282 = vrcp.f32 %v178_v11 }
  0x86   :  { %284 = vrcp.f32 %v200_v12 }
  0x8d   :  { %v279_v13 = vpop.eup %278 }
  0x8e   :  { %v281_v14 = vpop.eup %280  ;;  %138 = vst [vmem:[#allocation12] sm:$0x1] %v279_v13 }
  0x8f   :  { %v283_v15 = vpop.eup %282  ;;  %160 = vst [vmem:[#allocation12 + $0x1] sm:$0x1] %v281_v14 }
  0x90   :  { %v285_v16 = vpop.eup %284  ;;  %182 = vst [vmem:[#allocation12 + $0x2] sm:$0x1] %v283_v15 }
  0x91   :  { %204 = vst [vmem:[#allocation12 + $0x3] sm:$0x1] %v285_v16 }
  0x92   :  { %367 = shalt.err (!%p364_p4)
}
  0x93   :  { %s368_s19 = scalar_lea.hbm %s509_s5, 64 }
  0x94   :  { %p369_p5 = scmp.ne.s32.totalorder %s509_s5, %s368_s19  ;;  %p372_p6 = scmp.lt.u32.totalorder %s368_s19, %s509_s5 }
  0x96   :  { %p374_p7 = pnand %p372_p6, %p369_p5 }
  0x98   :  { %377 = shalt.err (!%p374_p7)
}
  0x99   :  { %s394_s23 = smov 16   ;;  %s395_s24 = smov 1  }
  0x9a   :  { %216 = dma.vmem_to_hbm [thread:$0]  %s211_s17, 64, %s509_s5, [#allocation4], %s394_s23, %s394_s23, %s395_s24  }
  0x9b   :  { %386 = dma.done.wait [#allocation4], 64  }
  0x9c   :  { %387 = vsyncadd [#allocation4], 4294967232 }
  0x9d   :  { %220 = vsyncpa [#allocation3], 1 }
  0x9e   :  { %221 = vsyncpa [#allocation4], 1 }
  0x9f   :  { %222 = vsyncpa [#allocation5], 1 }
  0xa0   :  { %223 = vsyncpa [#allocation8], 1 }
  0xa1   :  { %224 = vsyncpa [#allocation11], 1 }

</bundles_post_ra>
